<compile_context>
chip_gen: v5e
topology: v5e:2x2
jax: 0.10.0
libtpu: 0.0.40
codegen_flags: <defaults>
</compile_context>

<pallas_src>
import jax
import jax.numpy as jnp
from jax.experimental import pallas as pl
from jax.experimental.pallas import tpu as pltpu


def _make_mlp_kernel(tb, cw):
    """Build the kernel for a batch tile of width tb, chunked into cw columns."""
    assert tb % cw == 0
    n_chunks = tb // cw
    unroll = min(8, n_chunks)

    def mlp_kernel(x_ref, w1_ref, b1_ref, w2_ref, b2_ref, w3_ref, b3_ref, o_ref):
        # Small parameters: load once per grid step, live in vregs across chunks.
        w1 = w1_ref[...]            # (128, 1)  f32   fc1.weight
        b1 = b1_ref[...]            # (128, 1)  f32   fc1.bias
        w2 = w2_ref[...]            # (64, 128) bf16  fc2.weight (MXU operand)
        b2 = b2_ref[...]            # (64, 1)   f32   fc2.bias
        w3 = w3_ref[...]            # (64, 1)   f32   fc3.weight (pre-transposed)
        b3 = b3_ref[0]              # scalar    f32   fc3.bias (SMEM)

        def body(c, carry):
            start = pl.multiple_of(c * cw, cw)
            x = x_ref[:, pl.ds(start, cw)]                        # (1, cw)

            # Layer 1 (in=1 -> 128): K=1 matmul == outer product -> VPU broadcast.
            h1 = jnp.maximum(w1 * x + b1, 0.0)                    # (128, cw) f32

            # Layer 2 (128 -> 64): the only real matmul -> bf16 MXU, f32 acc.
            h2 = jnp.dot(w2, h1.astype(jnp.bfloat16),
                         preferred_element_type=jnp.float32)      # (64, cw) f32
            h2 = jnp.maximum(h2 + b2, 0.0)

            # Layer 3 (64 -> 1): N=1 matmul == dot product -> VPU mul + XLU reduce.
            y = jnp.sum(w3 * h2, axis=0, keepdims=True) + b3      # (1, cw)

            o_ref[:, pl.ds(start, cw)] = y.astype(o_ref.dtype)
            return carry

        jax.lax.fori_loop(0, n_chunks, body, 0, unroll=unroll)

    return mlp_kernel


def toy_model_forward(x, params, tb=16384, cw=256):
    """x: (B, 1) float32. Returns (B, 1) float32, matching ToyModel.forward."""
    w1, b1, w2, b2, w3c, b3 = params
    B = x.shape[0]

    # Batch in units of 128 lanes (lane-dense, no masked stores).
    cols = pl.cdiv(max(B, 1), 128)
    # Number of grid steps: respect the tb cap; prefer >=2 steps so v7x's two
    # TensorCores both get work (no-op on v5e/v6e).
    n_steps = pl.cdiv(cols * 128, tb)
    if cols >= 2:
        n_steps = max(n_steps, 2)
    tb_eff = 128 * pl.cdiv(cols, n_steps)          # per-step tile, multiple of 128, <= tb
    grid_n = pl.cdiv(cols * 128, tb_eff)
    b_pad = grid_n * tb_eff

    # In-kernel lane-chunk width: largest of (cw, 256, 128) dividing tb_eff.
    cw_eff = next(c for c in (cw, 256, 128) if tb_eff % c == 0)

    xt = x.reshape(1, B)                           # batch -> lane axis
    if b_pad != B:
        xt = jnp.pad(xt, ((0, 0), (0, b_pad - B)))

    w2_bf16 = w2.astype(jnp.bfloat16)              # single-pass MXU operand

    def weight_spec(shape):
        # Full block, constant index_map -> VMEM-resident across all grid steps.
        return pl.BlockSpec(shape, lambda i: (0, 0))

    # Advisory cost for XLA's scheduler.
    flops = 2 * b_pad * (128 + 128 * 64 + 64)
    bytes_accessed = (2 * b_pad * 4                               # x in + y out (f32)
                      + 4 * (128 + 128 + 64 + 64 + 1)             # f32 params
                      + 2 * 64 * 128)                             # bf16 w2

    out = pl.pallas_call(
        _make_mlp_kernel(tb_eff, cw_eff),
        out_shape=jax.ShapeDtypeStruct((1, b_pad), jnp.float32),
        grid=(grid_n,),
        in_specs=[
            pl.BlockSpec((1, tb_eff), lambda i: (0, i)),          # x tile (lane-dense)
            weight_spec((128, 1)),                                # fc1.weight
            weight_spec((128, 1)),                                # fc1.bias
            weight_spec((64, 128)),                               # fc2.weight (bf16)
            weight_spec((64, 1)),                                 # fc2.bias
            weight_spec((64, 1)),                                 # fc3.weight^T
            pl.BlockSpec(memory_space=pltpu.MemorySpace.SMEM),    # fc3.bias scalar
        ],
        out_specs=pl.BlockSpec((1, tb_eff), lambda i: (0, i)),
        compiler_params=pltpu.CompilerParams(
            dimension_semantics=("parallel",),                    # 2 TCs on v7x
            vmem_limit_bytes=48 * 1024 * 1024,
        ),
        cost_estimate=pl.CostEstimate(
            flops=flops, transcendentals=0, bytes_accessed=bytes_accessed),
    )(xt, w1, b1, w2_bf16, b2, w3c, b3)

    return out[:, :B].reshape(B, 1)


def init_params(key):
    # PyTorch default nn.Linear init: U(-1/sqrt(fan_in), 1/sqrt(fan_in)),
    # weights in (out, in) layout.
    def linear(key, fan_in, fan_out):
        kw, kb = jax.random.split(key)
        bound = 1.0 / jnp.sqrt(jnp.float32(fan_in))
        w = jax.random.uniform(kw, (fan_out, fan_in), jnp.float32, -bound, bound)
        b = jax.random.uniform(kb, (fan_out,), jnp.float32, -bound, bound)
        return w, b

    k1, k2, k3 = jax.random.split(key, 3)
    w1, b1 = linear(k1, 1, 128)     # (128, 1), (128,)
    w2, b2 = linear(k2, 128, 64)    # (64, 128), (64,)
    w3, b3 = linear(k3, 64, 1)      # (1, 64),  (1,)
    # Kernel layout: biases as columns, fc3 weight pre-transposed to a column.
    return (w1, b1.reshape(128, 1), w2, b2.reshape(64, 1), w3.T, b3)


def reference_forward(x, params):
    """Pure-JAX reference using the same bf16-MXU math for layer 2."""
    w1, b1, w2, b2, w3c, b3 = params
    h1 = jnp.maximum(x @ w1.T + b1.reshape(1, -1), 0.0)
    h2 = jnp.dot(h1.astype(jnp.bfloat16), w2.astype(jnp.bfloat16).T,
                 preferred_element_type=jnp.float32)
    h2 = jnp.maximum(h2 + b2.reshape(1, -1), 0.0)
    return h2 @ w3c + b3.reshape(1, 1)


if __name__ == "__main__":
    key = jax.random.PRNGKey(0)
    kx, kp, kx2 = jax.random.split(key, 3)
    params = init_params(kp)

    # Small batch (ToyModel's fc1 implies feature dim = 1).
    B = 8
    x = jax.random.normal(kx, (B, 1), jnp.float32)
    y = jax.block_until_ready(toy_model_forward(x, params))
    y_ref = reference_forward(x, params)
    assert y.shape == (B, 1)
    assert jnp.allclose(y, y_ref, atol=1e-3, rtol=1e-3)

    # A non-tile-aligned batch to exercise the multi-step tiling + padding path.
    B2 = 1000
    x2 = jax.random.normal(kx2, (B2, 1), jnp.float32)
    y2 = jax.block_until_ready(toy_model_forward(x2, params))
    y2_ref = reference_forward(x2, params)
    assert y2.shape == (B2, 1)
    assert jnp.allclose(y2, y2_ref, atol=1e-3, rtol=1e-3)

    print("KERNEL_OK")
</pallas_src>

<mosaic_0001>
module attributes {stable_mosaic.version = 11 : i64} {
  func.func @mlp_kernel(%arg0: i32, %arg1: memref<1x128xf32, #tpu.memory_space<vmem>>, %arg2: memref<128x1xf32, #tpu.memory_space<vmem>>, %arg3: memref<128x1xf32, #tpu.memory_space<vmem>>, %arg4: memref<64x128xbf16, #tpu.memory_space<vmem>>, %arg5: memref<64x1xf32, #tpu.memory_space<vmem>>, %arg6: memref<64x1xf32, #tpu.memory_space<vmem>>, %arg7: memref<1xf32, #tpu.memory_space<smem>>, %arg8: memref<1x128xf32, #tpu.memory_space<vmem>>) attributes {dimension_semantics = [#tpu.dimension_semantics<parallel>], iteration_bounds = array<i64: 1>, scalar_prefetch = 0 : i64, scratch_operands = 0 : i64, tpu.core_type = #tpu.core_type<tc>, window_params = [{transform_indices = @transform_0, window_bounds = array<i64: 1, 128>}, {pipeline_mode = #tpu.pipeline_mode<synchronous>, transform_indices = @transform_1, window_bounds = array<i64: 128, 1>}, {pipeline_mode = #tpu.pipeline_mode<synchronous>, transform_indices = @transform_2, window_bounds = array<i64: 128, 1>}, {pipeline_mode = #tpu.pipeline_mode<synchronous>, transform_indices = @transform_3, window_bounds = array<i64: 64, 128>}, {pipeline_mode = #tpu.pipeline_mode<synchronous>, transform_indices = @transform_4, window_bounds = array<i64: 64, 1>}, {pipeline_mode = #tpu.pipeline_mode<synchronous>, transform_indices = @transform_5, window_bounds = array<i64: 64, 1>}, {transform_indices = @transform_6, window_bounds = array<i64: 1>}, {transform_indices = @transform_7, window_bounds = array<i64: 1, 128>}]} {
    %c0 = arith.constant 0 : index
    %c0_0 = arith.constant 0 : index
    %0 = vector.load %arg2[%c0, %c0_0] : memref<128x1xf32, #tpu.memory_space<vmem>>, vector<128x1xf32>
    %c0_1 = arith.constant 0 : index
    %c0_2 = arith.constant 0 : index
    %1 = vector.load %arg3[%c0_1, %c0_2] : memref<128x1xf32, #tpu.memory_space<vmem>>, vector<128x1xf32>
    %c0_3 = arith.constant 0 : index
    %c0_4 = arith.constant 0 : index
    %2 = vector.load %arg4[%c0_3, %c0_4] : memref<64x128xbf16, #tpu.memory_space<vmem>>, vector<64x128xbf16>
    %c0_5 = arith.constant 0 : index
    %c0_6 = arith.constant 0 : index
    %3 = vector.load %arg5[%c0_5, %c0_6] : memref<64x1xf32, #tpu.memory_space<vmem>>, vector<64x1xf32>
    %c0_7 = arith.constant 0 : index
    %c0_8 = arith.constant 0 : index
    %4 = vector.load %arg6[%c0_7, %c0_8] : memref<64x1xf32, #tpu.memory_space<vmem>>, vector<64x1xf32>
    %c0_9 = arith.constant 0 : index
    %5 = memref.load %arg7[%c0_9] : memref<1xf32, #tpu.memory_space<smem>>
    %c0_i32 = arith.constant 0 : i32
    %c128_i32 = arith.constant 128 : i32
    %6 = arith.muli %c0_i32, %c128_i32 : i32
    %7 = tpu.assume_multiple %6, 128 : i32
    %c0_10 = arith.constant 0 : index
    %8 = arith.index_cast %7 : i32 to index
    %9 = vector.load %arg1[%c0_10, %8] : memref<1x128xf32, #tpu.memory_space<vmem>>, vector<1x128xf32>
    %10 = vector.broadcast %0 : vector<128x1xf32> to vector<128x128xf32>
    %11 = vector.broadcast %9 : vector<1x128xf32> to vector<128x128xf32>
    %12 = arith.mulf %10, %11 : vector<128x128xf32>
    %13 = vector.broadcast %1 : vector<128x1xf32> to vector<128x128xf32>
    %14 = arith.addf %12, %13 : vector<128x128xf32>
    %cst = arith.constant 0.000000e+00 : f32
    %15 = vector.broadcast %cst : f32 to vector<128x128xf32>
    %16 = arith.maximumf %14, %15 : vector<128x128xf32>
    %17 = arith.truncf %16 : vector<128x128xf32> to vector<128x128xbf16>
    %cst_11 = arith.constant dense<0.000000e+00> : vector<64x128xf32>
    %18 = tpu.matmul %2, %17, %cst_11 {dimension_numbers = #tpu.dot_dimension_numbers<[1], [0], [0], [1], [0, 0, 1, 1], [], []>} : vector<64x128xbf16>, vector<128x128xbf16>, vector<64x128xf32> -> vector<64x128xf32>
    %19 = vector.broadcast %3 : vector<64x1xf32> to vector<64x128xf32>
    %20 = arith.addf %18, %19 : vector<64x128xf32>
    %cst_12 = arith.constant 0.000000e+00 : f32
    %21 = vector.broadcast %cst_12 : f32 to vector<64x128xf32>
    %22 = arith.maximumf %20, %21 : vector<64x128xf32>
    %23 = vector.broadcast %4 : vector<64x1xf32> to vector<64x128xf32>
    %24 = arith.mulf %23, %22 : vector<64x128xf32>
    %cst_13 = arith.constant dense<0.000000e+00> : vector<128xf32>
    %25 = vector.multi_reduction <add>, %24, %cst_13 [0] : vector<64x128xf32> to vector<128xf32>
    %26 = vector.shape_cast %25 : vector<128xf32> to vector<1x128xf32>
    %27 = vector.broadcast %5 : f32 to vector<1x128xf32>
    %28 = arith.addf %26, %27 : vector<1x128xf32>
    %c0_14 = arith.constant 0 : index
    %29 = arith.index_cast %7 : i32 to index
    %30 = vector.load %arg8[%c0_14, %29] : memref<1x128xf32, #tpu.memory_space<vmem>>, vector<1x128xf32>
    tpu.vector_store %arg8[%c0_14, %29], %28 {strides = array<i32>} : memref<1x128xf32, #tpu.memory_space<vmem>>, vector<1x128xf32>,
    %c1_i32 = arith.constant 1 : i32
    return
  }
  func.func @transform_0(%arg0: i32) -> (i32, i32) {
    %c0_i32 = arith.constant 0 : i32
    %c0_i32_0 = arith.constant 0 : i32
    return %c0_i32, %arg0 : i32, i32
  }
  func.func @transform_1(%arg0: i32) -> (i32, i32) {
    %c0_i32 = arith.constant 0 : i32
    %c0_i32_0 = arith.constant 0 : i32
    %c0_i32_1 = arith.constant 0 : i32
    return %c0_i32, %c0_i32_0 : i32, i32
  }
  func.func @transform_2(%arg0: i32) -> (i32, i32) {
    %c0_i32 = arith.constant 0 : i32
    %c0_i32_0 = arith.constant 0 : i32
    %c0_i32_1 = arith.constant 0 : i32
    return %c0_i32, %c0_i32_0 : i32, i32
  }
  func.func @transform_3(%arg0: i32) -> (i32, i32) {
    %c0_i32 = arith.constant 0 : i32
    %c0_i32_0 = arith.constant 0 : i32
    %c0_i32_1 = arith.constant 0 : i32
    return %c0_i32, %c0_i32_0 : i32, i32
  }
  func.func @transform_4(%arg0: i32) -> (i32, i32) {
    %c0_i32 = arith.constant 0 : i32
    %c0_i32_0 = arith.constant 0 : i32
    %c0_i32_1 = arith.constant 0 : i32
    return %c0_i32, %c0_i32_0 : i32, i32
  }
  func.func @transform_5(%arg0: i32) -> (i32, i32) {
    %c0_i32 = arith.constant 0 : i32
    %c0_i32_0 = arith.constant 0 : i32
    %c0_i32_1 = arith.constant 0 : i32
    return %c0_i32, %c0_i32_0 : i32, i32
  }
  func.func @transform_6(%arg0: i32) -> i32 {
    %c0_i32 = arith.constant 0 : i32
    %c0_i32_0 = arith.constant 0 : i32
    return %c0_i32 : i32
  }
  func.func @transform_7(%arg0: i32) -> (i32, i32) {
    %c0_i32 = arith.constant 0 : i32
    %c0_i32_0 = arith.constant 0 : i32
    return %c0_i32, %arg0 : i32, i32
  }
}

</mosaic_0001>

<bundles_post_ra>
// kernel: tpu_custom_call.1
= control target key start
LH: loop header
LB: loop body
LE: loop exit
PB: predicated region body
PF: predicated region fallthrough
CT: control target
= control target key end

     0   :  { %v562_v3 = vmov 0   ;;  %s805_s0 = inlined_call_operand.vmem [shape: f32[1,128], index: 0, kind: input, shape index: {}]   ;;  %s806_s1 = inlined_call_operand.vmem [shape: f32[128,1], index: 1, kind: input, shape index: {}]   ;;  %s807_s2 = inlined_call_operand.vmem [shape: f32[128,1], index: 2, kind: input, shape index: {}]   ;;  %s808_s3 = inlined_call_operand.vmem [shape: bf16[64,128], index: 3, kind: input, shape index: {}]   ;;  %s809_s4 = inlined_call_operand.vmem [shape: f32[64,1], index: 4, kind: input, shape index: {}]   ;;  %s810_s5 = inlined_call_operand.vmem [shape: f32[64,1], index: 5, kind: input, shape index: {}]   ;;  %s811_s6 = inlined_call_operand.<no memory space> [shape: f32[1], index: 6, kind: input, shape index: {}]   ;;  %s812_s7 = inlined_call_operand.hbm [shape: f32[1,128], index: 7, kind: output, shape index: {}]  }
   0x1   :  { %v32_v0 = vld [vmem:[%s806_s1 + $0x20] sm:$0xff]  ;;  %v30_v1 = vld [vmem:[%s806_s1 + $0x10] sm:$0xff]  ;;  %534 = vset.pattern.permute.xlu2 %v562_v3  ;;  %533 = vset.pattern.permute.xlu1 %v562_v3 }
   0x2   :  { %v28_v2 = vld [vmem:[%s806_s1] sm:$0xff]  ;;  %532 = vset.pattern.permute.xlu0 %v562_v3  ;;  %108 = vperm.xlu2 %534, %v32_v0  }
   0x3   :  { %98 = vperm.xlu1 %533, %v30_v1   ;;  %88 = vperm.xlu0 %532, %v28_v2  }
   0x4   :  { %13 = vsyncpa [#allocation4], 0  ;;  %v33_v4 = vld [vmem:[%s806_s1 + $0x28] sm:$0xff]  ;;  %v31_v5 = vld [vmem:[%s806_s1 + $0x18] sm:$0xff]  ;;  %s563_s8 = smov [#allocation3]   ;;  %s477_s12 = sshll.u32 %s812_s7, 4  ;;  %s478_s12 = int_to_ptr.hbm [resolvable:$true] %s477_s12 }
   0x5   :  { %v29_v6 = vld [vmem:[%s806_s1 + $0x8] sm:$0xff]  ;;  %v43_v7 = vld [vmem:[%s806_s1 + $0x78] sm:$0xff]  ;;  %v42_v8 = vld [vmem:[%s806_s1 + $0x70] sm:$0xff]  ;;  %s475_s9 = sshll.u32 %s563_s8, 4  ;;  %s476_s9 = int_to_ptr.vmem [resolvable:$true] %s475_s9 }
   0x6   :  { %v34_v9 = vld [vmem:[%s806_s1 + $0x30] sm:$0xff]  ;;  %v40_v10 = vld [vmem:[%s806_s1 + $0x60] sm:$0xff]  ;;  %v59_v11 = vld [vmem:[%s807_s2 + $0x78] sm:$0xff] }
   0x7   :  { %v58_v12 = vld [vmem:[%s807_s2 + $0x70] sm:$0xff]  ;;  %v57_v13 = vld [vmem:[%s807_s2 + $0x68] sm:$0xff]  ;;  %v56_v14 = vld [vmem:[%s807_s2 + $0x60] sm:$0xff] }
   0x8   :  { %v41_v15 = vld [vmem:[%s806_s1 + $0x68] sm:$0xff]  ;;  %v54_v16 = vld [vmem:[%s807_s2 + $0x50] sm:$0xff]  ;;  %v39_v17 = vld [vmem:[%s806_s1 + $0x58] sm:$0xff] }
   0x9   :  { %v38_v18 = vld [vmem:[%s806_s1 + $0x50] sm:$0xff]  ;;  %v37_v19 = vld [vmem:[%s806_s1 + $0x48] sm:$0xff]  ;;  %v36_v20 = vld [vmem:[%s806_s1 + $0x40] sm:$0xff] }
   0xa   :  { %113 = vperm.xlu2 %534, %v33_v4   ;;  %v55_v21 = vld [vmem:[%s807_s2 + $0x58] sm:$0xff]  ;;  %v53_v23 = vld [vmem:[%s807_s2 + $0x48] sm:$0xff]  ;;  %v52_v24 = vld [vmem:[%s807_s2 + $0x40] sm:$0xff] }
   0xb   :  { %103 = vperm.xlu1 %533, %v31_v5   ;;  %93 = vperm.xlu0 %532, %v29_v6   ;;  %v35_v22 = vld [vmem:[%s806_s1 + $0x38] sm:$0xff]  ;;  %v48_v25 = vld [vmem:[%s807_s2 + $0x20] sm:$0xff]  ;;  %v50_v27 = vld [vmem:[%s807_s2 + $0x30] sm:$0xff] }
   0xc   :  { %v51_v26 = vld [vmem:[%s807_s2 + $0x38] sm:$0xff]  ;;  %v46_v29 = vld [vmem:[%s807_s2 + $0x10] sm:$0xff]  ;;  %v49_v30 = vld [vmem:[%s807_s2 + $0x28] sm:$0xff] }
   0xd   :  { %v47_v28 = vld [vmem:[%s807_s2 + $0x18] sm:$0xff]  ;;  %v68_v31 = vld [vmem:[%s809_s4] sm:$0xff]  ;;  %v45_v32 = vld [vmem:[%s807_s2 + $0x8] sm:$0xff] }
   0xe   :  { %v44_v33 = vld [vmem:[%s807_s2] sm:$0xff]  ;;  %v71_v34 = vld [vmem:[%s809_s4 + $0x18] sm:$0xff]  ;;  %v70_v35 = vld [vmem:[%s809_s4 + $0x10] sm:$0xff] }
   0xf   :  { %v69_v36 = vld [vmem:[%s809_s4 + $0x8] sm:$0xff]  ;;  %v76_v39 = vld [vmem:[%s810_s5] sm:$0xff]  ;;  %v79_v41 = vld [vmem:[%s810_s5 + $0x18] sm:$0xff] }
  0x10   :  { %v77_v38 = vld [vmem:[%s810_s5 + $0x8] sm:$0xff]  ;;  %v72_v40 = vld [vmem:[%s809_s4 + $0x20] sm:$0xff]  ;;  %v78_v44 = vld [vmem:[%s810_s5 + $0x10] sm:$0xff] }
  0x11   :  { %v73_v43 = vld [vmem:[%s809_s4 + $0x28] sm:$0xff]  ;;  %v75_v45 = vld [vmem:[%s809_s4 + $0x38] sm:$0xff]  ;;  %v80_v46 = vld [vmem:[%s810_s5 + $0x20] sm:$0xff] }
  0x12   :  { %163 = vperm.xlu2 %534, %v43_v7   ;;  %v74_v47 = vld [vmem:[%s809_s4 + $0x30] sm:$0xff]  ;;  %v83_v51 = vld [vmem:[%s810_s5 + $0x38] sm:$0xff]  ;;  %v81_v53 = vld [vmem:[%s810_s5 + $0x28] sm:$0xff] }
  0x13   :  { %158 = vperm.xlu1 %533, %v42_v8   ;;  %118 = vperm.xlu0 %532, %v34_v9   ;;  %v82_v52 = vld [vmem:[%s810_s5 + $0x30] sm:$0xff]  ;;  %v763_v60 = vld [vmem:[%s805_s0] ss:$0 sm:$0xff] }
  0x1a   :  { %148 = vperm.xlu2 %534, %v40_v10  }
  0x1b   :  { %262 = vperm.xlu1 %533, %v59_v11   ;;  %257 = vperm.xlu0 %532, %v58_v12  }
  0x22   :  { %252 = vperm.xlu2 %534, %v57_v13  }
  0x23   :  { %247 = vperm.xlu1 %533, %v56_v14   ;;  %153 = vperm.xlu0 %532, %v41_v15  }
  0x2a   :  { %237 = vperm.xlu2 %534, %v54_v16  }
  0x2b   :  { %143 = vperm.xlu1 %533, %v39_v17   ;;  %138 = vperm.xlu0 %532, %v38_v18  }
  0x32   :  { %133 = vperm.xlu2 %534, %v37_v19  }
  0x33   :  { %128 = vperm.xlu1 %533, %v36_v20   ;;  %242 = vperm.xlu0 %532, %v55_v21  }
  0x3a   :  { %123 = vperm.xlu2 %534, %v35_v22  }
  0x3b   :  { %232 = vperm.xlu1 %533, %v53_v23   ;;  %227 = vperm.xlu0 %532, %v52_v24  }
  0x42   :  { %207 = vperm.xlu2 %534, %v48_v25  }
  0x43   :  { %222 = vperm.xlu1 %533, %v51_v26   ;;  %217 = vperm.xlu0 %532, %v50_v27  }
  0x4a   :  { %202 = vperm.xlu2 %534, %v47_v28  }
  0x4b   :  { %197 = vperm.xlu1 %533, %v46_v29   ;;  %212 = vperm.xlu0 %532, %v49_v30  }
  0x52   :  { %307 = vperm.xlu2 %534, %v68_v31  }
  0x53   :  { %192 = vperm.xlu1 %533, %v45_v32   ;;  %187 = vperm.xlu0 %532, %v44_v33  }
  0x5a   :  { %322 = vperm.xlu2 %534, %v71_v34  }
  0x5b   :  { %317 = vperm.xlu1 %533, %v70_v35   ;;  %312 = vperm.xlu0 %532, %v69_v36  }
  0x5c   :  { %v712_v37 = vpop.permute.xlu2 %108 }
  0x62   :  { %413 = vperm.xlu2 %534, %v77_v38  }
  0x63   :  { %408 = vperm.xlu1 %533, %v76_v39   ;;  %327 = vperm.xlu0 %532, %v72_v40  }
  0x64   :  { %v726_v42 = vpop.permute.xlu2 %113 }
  0x6a   :  { %423 = vperm.xlu2 %534, %v79_v41  }
  0x6b   :  { %332 = vperm.xlu1 %533, %v73_v43   ;;  %418 = vperm.xlu0 %532, %v78_v44  }
  0x6c   :  { %v164_v48 = vpop.permute.xlu2 %163 }
  0x6d   :  { %v184_v61 = vmul.f32 %v763_v60, %v164_v48 }
  0x72   :  { %342 = vperm.xlu2 %534, %v75_v45  }
  0x73   :  { %428 = vperm.xlu1 %533, %v80_v46   ;;  %337 = vperm.xlu0 %532, %v74_v47  }
  0x74   :  { %v149_v54 = vpop.permute.xlu2 %148 }
  0x75   :  { %v743_v49 = vpop.permute.xlu1 %98  ;;  %v745_v50 = vpop.permute.xlu0 %88  ;;  %v181_v7 = vmul.f32 %v763_v60, %v149_v54 }
  0x7a   :  { %443 = vperm.xlu2 %534, %v83_v51  }
  0x7b   :  { %438 = vperm.xlu1 %533, %v82_v52   ;;  %433 = vperm.xlu0 %532, %v81_v53   ;;  %v173_v52 = vmul.f32 %v763_v60, %v712_v37 }
  0x7c   :  { %v253_v59 = vpop.permute.xlu2 %252 }
  0x7d   :  { %v756_v55 = vpop.permute.xlu1 %103  ;;  %v758_v56 = vpop.permute.xlu0 %93 }
  0x7e   :  { %v172_v53 = vmul.f32 %v763_v60, %v756_v55 }
  0x84   :  { %v238_v3 = vpop.permute.xlu2 %237 }
  0x85   :  { %v159_v57 = vpop.permute.xlu1 %158  ;;  %v119_v58 = vpop.permute.xlu0 %118 }
  0x86   :  { %v183_v62 = vmul.f32 %v763_v60, %v159_v57  ;;  %v175_v40 = vmul.f32 %v763_v60, %v119_v58  ;;  %v174_v57 = vmul.f32 %v763_v60, %v726_v42  ;;  %v171_v58 = vmul.f32 %v763_v60, %v743_v49 }
  0x87   :  { %v169_v42 = vmul.f32 %v763_v60, %v745_v50  ;;  %v170_v49 = vmul.f32 %v763_v60, %v758_v56  ;;  %v502_v50 = vld [vmem:[%s808_s3] sm:$0xff]  ;;  %v503_v56 = vld [vmem:[%s808_s3 + $0x8] sm:$0xff] }
  0x8c   :  { %v134_v13 = vpop.permute.xlu2 %133 }
  0x8d   :  { %v263_v63 = vpop.permute.xlu1 %262  ;;  %v258_v0 = vpop.permute.xlu0 %257  ;;  %v178_v29 = vmul.f32 %v763_v60, %v134_v13  ;;  %v505_v13 = vld [vmem:[%s808_s3 + $0x18] sm:$0xff] }
  0x8e   :  { %v280_v1 = vadd.f32 %v263_v63, %v184_v61  ;;  %v279_v2 = vadd.f32 %v258_v0, %v183_v62 }
  0x90   :  { %v296_v4 = vmax.f32 %v280_v1, 0.0  ;;  %v295_v5 = vmax.f32 %v279_v2, 0.0 }
  0x92   :  { %v304_v6 = vpack.c.bf16 %v296_v4, %v295_v5 }
  0x94   :  { %369 = vmatpush.bf16.msra.mxu0 %v304_v6  ;;  %506 = vmatpush.bf16.msra.mxu1 %v304_v6  ;;  %v124_v20 = vpop.permute.xlu2 %123 }
  0x95   :  { %507 = vmatpush.bf16.msra.mxu2 %v304_v6  ;;  %508 = vmatpush.bf16.msra.mxu3 %v304_v6  ;;  %v248_v8 = vpop.permute.xlu1 %247  ;;  %v154_v9 = vpop.permute.xlu0 %153  ;;  %v176_v41 = vmul.f32 %v763_v60, %v124_v20 }
  0x96   :  { %v277_v10 = vadd.f32 %v248_v8, %v181_v7  ;;  %v182_v11 = vmul.f32 %v763_v60, %v154_v9 }
  0x98   :  { %v278_v12 = vadd.f32 %v253_v59, %v182_v11  ;;  %v293_v14 = vmax.f32 %v277_v10, 0.0 }
  0x9a   :  { %v294_v15 = vmax.f32 %v278_v12, 0.0 }
  0x9c   :  { %v303_v16 = vpack.c.bf16 %v294_v15, %v293_v14  ;;  %v208_v35 = vpop.permute.xlu2 %207 }
  0x9d   :  { %v144_v17 = vpop.permute.xlu1 %143  ;;  %v139_v18 = vpop.permute.xlu0 %138  ;;  %v269_v59 = vadd.f32 %v208_v35, %v173_v52 }
  0x9e   :  { %370 = vmatpush.bf16.msra.mxu0 %v303_v16  ;;  %509 = vmatpush.bf16.msra.mxu1 %v303_v16  ;;  %v179_v19 = vmul.f32 %v763_v60, %v139_v18  ;;  %v180_v21 = vmul.f32 %v763_v60, %v144_v17 }
  0x9f   :  { %510 = vmatpush.bf16.msra.mxu2 %v303_v16  ;;  %511 = vmatpush.bf16.msra.mxu3 %v303_v16  ;;  %v285_v1 = vmax.f32 %v269_v59, 0.0 }
  0xa0   :  { %v275_v22 = vadd.f32 %v238_v3, %v179_v19 }
  0xa2   :  { %v291_v26 = vmax.f32 %v275_v22, 0.0 }
  0xa4   :  { %v203_v51 = vpop.permute.xlu2 %202 }
  0xa5   :  { %v129_v23 = vpop.permute.xlu1 %128  ;;  %v243_v24 = vpop.permute.xlu0 %242  ;;  %v268_v61 = vadd.f32 %v203_v51, %v172_v53 }
  0xa6   :  { %v276_v25 = vadd.f32 %v243_v24, %v180_v21  ;;  %v177_v30 = vmul.f32 %v763_v60, %v129_v23  ;;  %v504_v60 = vld [vmem:[%s808_s3 + $0x10] sm:$0xff] }
  0xa7   :  { %v284_v2 = vmax.f32 %v268_v61, 0.0 }
  0xa8   :  { %v292_v27 = vmax.f32 %v276_v25, 0.0 }
  0xaa   :  { %v302_v28 = vpack.c.bf16 %v292_v27, %v291_v26 }
  0xac   :  { %371 = vmatpush.bf16.msra.mxu0 %v302_v28  ;;  %512 = vmatpush.bf16.msra.mxu1 %v302_v28  ;;  %v308_v14 = vpop.permute.xlu2 %307 }
  0xad   :  { %513 = vmatpush.bf16.msra.mxu2 %v302_v28  ;;  %514 = vmatpush.bf16.msra.mxu3 %v302_v28  ;;  %v233_v31 = vpop.permute.xlu1 %232  ;;  %v228_v32 = vpop.permute.xlu0 %227 }
  0xae   :  { %v274_v33 = vadd.f32 %v233_v31, %v178_v29  ;;  %v273_v34 = vadd.f32 %v228_v32, %v177_v30 }
  0xb0   :  { %v290_v36 = vmax.f32 %v274_v33, 0.0  ;;  %v289_v38 = vmax.f32 %v273_v34, 0.0 }
  0xb2   :  { %v301_v39 = vpack.c.bf16 %v290_v36, %v289_v38 }
  0xb4   :  { %372 = vmatpush.bf16.msra.mxu0 %v301_v39  ;;  %515 = vmatpush.bf16.msra.mxu1 %v301_v39  ;;  %v323_v17 = vpop.permute.xlu2 %322 }
  0xb5   :  { %516 = vmatpush.bf16.msra.mxu2 %v301_v39  ;;  %517 = vmatpush.bf16.msra.mxu3 %v301_v39  ;;  %v223_v43 = vpop.permute.xlu1 %222  ;;  %v218_v44 = vpop.permute.xlu0 %217 }
  0xb6   :  { %v272_v45 = vadd.f32 %v223_v43, %v176_v41  ;;  %v271_v46 = vadd.f32 %v218_v44, %v175_v40 }
  0xb8   :  { %v288_v47 = vmax.f32 %v272_v45, 0.0  ;;  %v287_v48 = vmax.f32 %v271_v46, 0.0 }
  0xba   :  { %v300_v54 = vpack.c.bf16 %v288_v47, %v287_v48 }
  0xbc   :  { %373 = vmatpush.bf16.msra.mxu0 %v300_v54  ;;  %518 = vmatpush.bf16.msra.mxu1 %v300_v54  ;;  %v414_v20 = vpop.permute.xlu2 %413 }
  0xbd   :  { %519 = vmatpush.bf16.msra.mxu2 %v300_v54  ;;  %520 = vmatpush.bf16.msra.mxu3 %v300_v54  ;;  %v198_v62 = vpop.permute.xlu1 %197  ;;  %v213_v63 = vpop.permute.xlu0 %212 }
  0xbe   :  { %v267_v0 = vadd.f32 %v198_v62, %v171_v58  ;;  %v270_v37 = vadd.f32 %v213_v63, %v174_v57 }
  0xc0   :  { %v283_v55 = vmax.f32 %v267_v0, 0.0  ;;  %v286_v3 = vmax.f32 %v270_v37, 0.0 }
  0xc2   :  { %v298_v4 = vpack.c.bf16 %v284_v2, %v283_v55  ;;  %v299_v5 = vpack.c.bf16 %v286_v3, %v285_v1 }
  0xc4   :  { %374 = vmatpush.bf16.msra.mxu0 %v299_v5  ;;  %521 = vmatpush.bf16.msra.mxu1 %v299_v5  ;;  %v424_v25 = vpop.permute.xlu2 %423 }
  0xc5   :  { %522 = vmatpush.bf16.msra.mxu2 %v299_v5  ;;  %523 = vmatpush.bf16.msra.mxu3 %v299_v5  ;;  %v193_v6 = vpop.permute.xlu1 %192  ;;  %v188_v7 = vpop.permute.xlu0 %187 }
  0xc6   :  { %v266_v8 = vadd.f32 %v193_v6, %v170_v49  ;;  %v265_v9 = vadd.f32 %v188_v7, %v169_v42 }
  0xc8   :  { %v282_v10 = vmax.f32 %v266_v8, 0.0  ;;  %v281_v11 = vmax.f32 %v265_v9, 0.0  ;;  %375 = vmatpush.bf16.msra.mxu0 %v298_v4  ;;  %524 = vmatpush.bf16.msra.mxu1 %v298_v4 }
  0xc9   :  { %525 = vmatpush.bf16.msra.mxu2 %v298_v4  ;;  %526 = vmatpush.bf16.msra.mxu3 %v298_v4 }
  0xca   :  { %v297_v12 = vpack.c.bf16 %v282_v10, %v281_v11 }
  0xcc   :  { %376 = vmatpush.bf16.msra.mxu0 %v297_v12  ;;  %527 = vmatpush.bf16.msra.mxu1 %v297_v12  ;;  %v343_v45 = vpop.permute.xlu2 %342 }
  0xcd   :  { %528 = vmatpush.bf16.msra.mxu2 %v297_v12  ;;  %529 = vmatpush.bf16.msra.mxu3 %v297_v12  ;;  %v313_v15 = vpop.permute.xlu0 %312  ;;  %v318_v16 = vpop.permute.xlu1 %317 }
  0xcf   :  { %377 = vmatmul.bf16.vlgmr.msra.gmra.mxu0 %v502_v50  ;;  %382 = vmatmul.bf16.vlgmr.msra.gmra.mxu1 %v503_v56  ;;  %v467_v50 = vstv %s811_s6 }
  0xd0   :  { %387 = vmatmul.bf16.vlgmr.msra.gmra.mxu2 %v504_v60  ;;  %392 = vmatmul.bf16.vlgmr.msra.gmra.mxu3 %v505_v13 }
  0xd4   :  { %v444_v42 = vpop.permute.xlu2 %443 }
  0xd5   :  { %v328_v18 = vpop.permute.xlu0 %327  ;;  %v409_v19 = vpop.permute.xlu1 %408 }
  0xdd   :  { %v419_v21 = vpop.permute.xlu0 %418  ;;  %v333_v24 = vpop.permute.xlu1 %332 }
  0xe5   :  { %v338_v35 = vpop.permute.xlu0 %337  ;;  %v429_v40 = vpop.permute.xlu1 %428 }
  0xed   :  { %v434_v37 = vpop.permute.xlu0 %433  ;;  %v439_v3 = vpop.permute.xlu1 %438 }
 0x14c   :  { %v378_v22 = vpop.f32.mrf.mxu0  ;;  %v383_v23 = vpop.f32.mrf.mxu1 }
 0x14d   :  { %v379_v26 = vadd.f32 %v378_v22, %v308_v14  ;;  %v384_v27 = vadd.f32 %v383_v23, %v318_v16 }
 0x14f   :  { %v398_v32 = vmax.f32 %v379_v26, 0.0  ;;  %v400_v36 = vmax.f32 %v384_v27, 0.0 }
 0x151   :  { %v446_v41 = vmul.f32 %v409_v19, %v398_v32  ;;  %v448_v46 = vmul.f32 %v419_v21, %v400_v36 }
 0x153   :  { %v388_v28 = vpop.f32.mrf.mxu2  ;;  %v393_v29 = vpop.f32.mrf.mxu3 }
 0x154   :  { %v380_v30 = vpop.f32.mrf.mxu0  ;;  %v385_v31 = vpop.f32.mrf.mxu1  ;;  %v389_v38 = vadd.f32 %v388_v28, %v328_v18  ;;  %v394_v48 = vadd.f32 %v393_v29, %v338_v35 }
 0x155   :  { %v381_v33 = vadd.f32 %v380_v30, %v313_v15  ;;  %v386_v34 = vadd.f32 %v385_v31, %v323_v17 }
 0x156   :  { %v402_v47 = vmax.f32 %v389_v38, 0.0  ;;  %v404_v63 = vmax.f32 %v394_v48, 0.0 }
 0x157   :  { %v399_v39 = vmax.f32 %v381_v33, 0.0  ;;  %v401_v44 = vmax.f32 %v386_v34, 0.0 }
 0x158   :  { %v450_v62 = vmul.f32 %v429_v40, %v402_v47  ;;  %v452_v4 = vmul.f32 %v439_v3, %v404_v63 }
 0x159   :  { %v447_v43 = vmul.f32 %v414_v20, %v399_v39  ;;  %v449_v57 = vmul.f32 %v424_v25, %v401_v44 }
 0x15b   :  { %v454_v51 = vadd.f32 %v447_v43, %v446_v41  ;;  %v390_v52 = vpop.f32.mrf.mxu2  ;;  %v395_v53 = vpop.f32.mrf.mxu3 }
 0x15c   :  { %v391_v54 = vadd.f32 %v390_v52, %v333_v24  ;;  %v396_v59 = vadd.f32 %v395_v53, %v343_v45 }
 0x15d   :  { %v455_v58 = vadd.f32 %v454_v51, %v448_v46 }
 0x15e   :  { %v403_v61 = vmax.f32 %v391_v54, 0.0  ;;  %v405_v55 = vmax.f32 %v396_v59, 0.0 }
 0x15f   :  { %v456_v0 = vadd.f32 %v455_v58, %v449_v57 }
 0x160   :  { %v451_v1 = vmul.f32 %v434_v37, %v403_v61  ;;  %v453_v49 = vmul.f32 %v444_v42, %v405_v55 }
 0x161   :  { %v457_v2 = vadd.f32 %v456_v0, %v450_v62 }
 0x163   :  { %v458_v5 = vadd.f32 %v457_v2, %v451_v1 }
 0x165   :  { %v459_v6 = vadd.f32 %v458_v5, %v452_v4 }
 0x167   :  { %v460_v7 = vadd.f32 %v459_v6, %v453_v49 }
 0x169   :  { %v461_v8 = vrot.slane %v460_v7, 4 }
 0x16b   :  { %v462_v9 = vadd.f32 %v461_v8, %v460_v7 }
 0x16d   :  { %v463_v10 = vrot.slane %v462_v9, 2 }
 0x16f   :  { %v464_v11 = vadd.f32 %v463_v10, %v462_v9 }
 0x171   :  { %v465_v12 = vrot.slane %v464_v11, 1 }
 0x173   :  { %v466_v56 = vadd.f32 %v465_v12, %v464_v11 }
 0x175   :  { %v468_v60 = vadd.f32 %v467_v50, %v466_v56 }
 0x177   :  { %469 = vst [vmem:[#allocation3] sm:$0x1] %v468_v60 }
 0x178   :  { %480 = dma.vmem_to_hbm [thread:$0]  %s476_s9, 16, %s478_s12, [#allocation4]  }
 0x179   :  { %560 = dma.done.wait [#allocation4], 16  }
 0x17a   :  { %561 = vsyncadd [#allocation4], 4294967280 }
 0x17b   :  { %485 = vsyncpa [#allocation4], 1 }

</bundles_post_ra>
